<compile_context>
chip_gen: v7x
topology: tpu7x:2x2x1
jax: 0.10.0
libtpu: 0.0.40
codegen_flags: <defaults>
</compile_context>

<pallas_src>
import numpy as np
import jax
import jax.numpy as jnp
from jax import lax
from jax.experimental import pallas as pl
from jax.experimental.pallas import tpu as pltpu

N_SED = 13
N_SCE = 39           # 3 * 13
N_USED = N_SED + N_SCE  # 52


def _round_up(x, m):
    return (x + m - 1) // m * m


def _cdiv(a, b):
    return -(-a // b)


def _shift_right_lanes(x, k):
    """result[:, p] = x[:, p - k] for p >= k, else 0 (zero-fill, no wrap)."""
    s, l = x.shape
    return jnp.concatenate(
        [jnp.zeros((s, k), x.dtype), x[:, : l - k]], axis=-1)


def _make_kernel(n_items, tile_items, has_partial):
    """Per-tile partial sums (BCE sum, squared-error sum) -> (1, 2, 128)."""

    def kernel(chan_ref, pred_ref, tgt_ref, part_ref):
        p = pred_ref[...].astype(jnp.float32)   # (tile_items, lanes)
        t = tgt_ref[...].astype(jnp.float32)

        c = chan_ref[...]                       # (1, lanes) int32, channel id per lane
        sed_m = c < N_SED                       # sed-probability lanes
        sce_m = jnp.logical_and(c >= N_SED, c < N_USED)  # sce lanes (excludes extras)

        if has_partial:
            i = pl.program_id(0)
            row_ids = i * tile_items + lax.broadcasted_iota(
                jnp.int32, (tile_items, 1), 0)
            valid = row_ids < n_items           # (tile_items, 1)
            keep_sed = jnp.logical_and(valid, sed_m)
            keep_sce = jnp.logical_and(valid, sce_m)
        else:
            keep_sed = sed_m
            keep_sce = sce_m

        # ---- BCE on sed lanes:  -(t*log(p) + (1-t)*log(1-p)), logs clamped at -100
        # (matches torch.nn.BCELoss).  Computed on all lanes, selected after:
        # the select (not arithmetic) discards NaN/Inf from non-sed lanes and
        # from garbage rows of a padded last tile.
        log_p = jnp.maximum(jnp.log(p), -100.0)
        log_1mp = jnp.maximum(jnp.log(1.0 - p), -100.0)
        bce_pos = t * (log_p - log_1mp) + log_1mp        # = t*log p + (1-t)*log(1-p)
        bce_sum = -jnp.sum(jnp.where(keep_sed, bce_pos, 0.0))

        # ---- MSE on sce lanes: (p * sed_rep - t)^2, where sed_rep is the
        # per-row sed label repeated 3x.  Built with three zero-fill lane
        # shifts of the sed-only label (shifts stay inside each 52-lane group).
        sed_only = jnp.where(sed_m, t, 0.0)
        sed_rep = (_shift_right_lanes(sed_only, N_SED)
                   + _shift_right_lanes(sed_only, 2 * N_SED)
                   + _shift_right_lanes(sed_only, 3 * N_SED))
        d = p * sed_rep - t
        sq_sum = jnp.sum(jnp.where(keep_sce, d * d, 0.0))

        # Lane-dense partial store: row 0 = BCE sum, row 1 = squared-error sum.
        part = jnp.concatenate(
            [jnp.broadcast_to(bce_sum, (1, 128)),
             jnp.broadcast_to(sq_sum, (1, 128))], axis=0)
        part_ref[...] = part.reshape(1, 2, 128)

    return kernel


def sed_sce_loss(output, target, loss_weight=(1.0, 2.0), max_tile_rows=None):
    """output, target: [B, T, C] with C >= 52. Returns scalar float32 loss."""
    B, T, C = output.shape
    assert C >= N_USED, "SedSCELoss expects at least 52 channels"
    assert target.shape == output.shape
    n_rows = B * T
    itemsize = np.dtype(output.dtype).itemsize

    # ---- pick the row -> lane packing factor (free row-major reshape) ----
    G = 1
    if C == N_USED:
        for cand in (32, 16, 8, 4, 2):       # 32 => 1664 lanes = 13 full vregs
            if n_rows % cand == 0:
                G = cand
                break
    n_items = n_rows // G
    lanes = C * G

    pred2d = output.reshape(n_items, lanes)
    tgt2d = target.reshape(n_items, lanes)

    # Per-lane channel ids (tiny constant input; DMA'd once, stays resident).
    if G == 1:
        chan = np.arange(lanes, dtype=np.int32)
    else:
        chan = np.tile(np.arange(N_USED, dtype=np.int32), G)
    chan2d = jnp.asarray(chan.reshape(1, lanes))

    # ---- VMEM-aware tile sizing (lane padding included, per-gen budget) ----
    try:
        info = pltpu.get_tpu_info()
        vmem_phys = int(getattr(info, "vmem_capacity_bytes", 0)) or (64 << 20)
    except Exception:  # no TPU info available; be conservative
        vmem_phys = 64 << 20
    in_budget = int(min(24 << 20, vmem_phys // 3))       # 2 inputs x 2 buffers

    sub = {4: 8, 2: 16, 1: 32}.get(itemsize, 8)          # sublane granule per dtype
    lanes_padded = _round_up(lanes, 128)                 # real VMEM lane footprint
    bytes_per_row = lanes_padded * itemsize
    rows_fit = in_budget // (4 * bytes_per_row)
    rows_fit = max(sub, rows_fit // sub * sub)
    if max_tile_rows is not None:
        cap = max(sub, (max_tile_rows // G) // sub * sub)
        rows_fit = min(rows_fit, cap)

    if n_items <= rows_fit:
        tile_items, num_tiles, has_partial = n_items, 1, False
    else:
        tile_items = rows_fit
        num_tiles = _cdiv(n_items, tile_items)
        has_partial = (n_items % tile_items) != 0

    vmem_limit = in_budget + (8 << 20)                   # headroom for out/chan/misc

    kernel = _make_kernel(n_items, tile_items, has_partial)

    cost = pl.CostEstimate(
        flops=int(12 * n_rows * N_USED),
        transcendentals=int(2 * n_rows * N_USED),
        bytes_accessed=int(2 * n_rows * C * itemsize
                           + num_tiles * 2 * 128 * 4 + lanes * 4),
    )

    partials = pl.pallas_call(
        kernel,
        out_shape=jax.ShapeDtypeStruct((num_tiles, 2, 128), jnp.float32),
        grid=(num_tiles,),
        in_specs=[
            pl.BlockSpec((1, lanes), lambda i: (0, 0)),          # channel ids
            pl.BlockSpec((tile_items, lanes), lambda i: (i, 0)),  # predictions
            pl.BlockSpec((tile_items, lanes), lambda i: (i, 0)),  # targets
        ],
        out_specs=pl.BlockSpec((1, 2, 128), lambda i: (i, 0, 0)),
        compiler_params=pltpu.CompilerParams(
            dimension_semantics=("parallel",),     # row tiles shard across TCs (v7x)
            vmem_limit_bytes=int(vmem_limit)),
        cost_estimate=cost,
    )(chan2d, pred2d, tgt2d)

    # Tiny final reduce + normalization + weighted combine in plain JAX
    # (loss weights are not baked into the kernel -> no recompile on change).
    bce_total = jnp.sum(partials[:, 0, 0])
    sq_total = jnp.sum(partials[:, 1, 0])
    loss_sed = bce_total / jnp.float32(n_rows * N_SED)
    loss_sce = sq_total / jnp.float32(n_rows * N_SCE)
    return loss_weight[0] * loss_sed + loss_weight[1] * loss_sce


def _reference_loss(output, target, loss_weight=(1.0, 2.0)):
    """Pure-JAX reference mirroring the PyTorch forward."""
    sed_out = output[..., :N_SED]
    sce_out = output[..., N_SED:N_USED]
    sed_lab = target[..., :N_SED]
    sce_lab = target[..., N_SED:N_USED]
    log_p = jnp.maximum(jnp.log(sed_out), -100.0)
    log_1mp = jnp.maximum(jnp.log(1.0 - sed_out), -100.0)
    loss_sed = jnp.mean(-(sed_lab * log_p + (1.0 - sed_lab) * log_1mp))
    sed_rep = jnp.concatenate([sed_lab, sed_lab, sed_lab], axis=-1)
    loss_sce = jnp.mean((sce_out * sed_rep - sce_lab) ** 2)
    return loss_weight[0] * loss_sed + loss_weight[1] * loss_sce


def _make_inputs(key, B, T, C):
    k1, k2, k3, k4 = jax.random.split(key, 4)
    n_extra = C - N_USED
    sed_p = jax.nn.sigmoid(jax.random.normal(k1, (B, T, N_SED), dtype=jnp.float32))
    sce_p = jax.random.normal(k2, (B, T, N_SCE + n_extra), dtype=jnp.float32) * 0.5
    out = jnp.concatenate([sed_p, sce_p], axis=-1)
    sed_l = (jax.random.uniform(k3, (B, T, N_SED)) > 0.5).astype(jnp.float32)
    sce_l = jax.random.normal(k4, (B, T, N_SCE + n_extra), dtype=jnp.float32) * 0.5
    tgt = jnp.concatenate([sed_l, sce_l], axis=-1)
    return out, tgt


if __name__ == "__main__":
    root = jax.random.PRNGKey(0)
    keys = jax.random.split(root, 5)

    cases = [
        # (B, T, C, max_tile_rows)     exercised path
        (2, 8, 52, None),    # packed G=16, single tile
        (3, 50, 52, 64),     # packed G=2, 3 tiles, partial last tile (row masking)
        (1, 7, 60, None),    # fallback G=1, extra channels > 52
        (2, 64, 52, None),   # packed G=32, lane dim = 13 full vregs
        (1, 25, 53, 8),      # fallback G=1, multi-tile with partial last tile
    ]

    for idx, (B, T, C, mtr) in enumerate(cases):
        out, tgt = _make_inputs(keys[idx], B, T, C)
        loss = jax.block_until_ready(sed_sce_loss(out, tgt, (1.0, 2.0), max_tile_rows=mtr))
        ref = jax.block_until_ready(_reference_loss(out, tgt, (1.0, 2.0)))
        assert jnp.allclose(loss, ref, rtol=1e-5, atol=1e-5), (idx, loss, ref)

    print("KERNEL_OK")
</pallas_src>

<mosaic_0001>
module attributes {stable_mosaic.version = 11 : i64} {
  func.func @kernel(%arg0: i32, %arg1: memref<1x832xi32, #tpu.memory_space<vmem>>, %arg2: memref<1x832xf32, #tpu.memory_space<vmem>>, %arg3: memref<1x832xf32, #tpu.memory_space<vmem>>, %arg4: memref<1x2x128xf32, #tpu.memory_space<vmem>>) attributes {dimension_semantics = [#tpu.dimension_semantics<parallel>], iteration_bounds = array<i64: 1>, scalar_prefetch = 0 : i64, scratch_operands = 0 : i64, tpu.core_type = #tpu.core_type<tc>, window_params = [{pipeline_mode = #tpu.pipeline_mode<synchronous>, transform_indices = @transform_0, window_bounds = array<i64: 1, 832>}, {transform_indices = @transform_1, window_bounds = array<i64: 1, 832>}, {transform_indices = @transform_2, window_bounds = array<i64: 1, 832>}, {transform_indices = @transform_3, window_bounds = array<i64: 1, 2, 128>}]} {
    %c0 = arith.constant 0 : index
    %c0_0 = arith.constant 0 : index
    %0 = vector.load %arg2[%c0, %c0_0] : memref<1x832xf32, #tpu.memory_space<vmem>>, vector<1x832xf32>
    %c0_1 = arith.constant 0 : index
    %c0_2 = arith.constant 0 : index
    %1 = vector.load %arg3[%c0_1, %c0_2] : memref<1x832xf32, #tpu.memory_space<vmem>>, vector<1x832xf32>
    %c0_3 = arith.constant 0 : index
    %c0_4 = arith.constant 0 : index
    %2 = vector.load %arg1[%c0_3, %c0_4] : memref<1x832xi32, #tpu.memory_space<vmem>>, vector<1x832xi32>
    %c13_i32 = arith.constant 13 : i32
    %3 = vector.broadcast %c13_i32 : i32 to vector<1x832xi32>
    %4 = arith.cmpi slt, %2, %3 : vector<1x832xi32>
    %c13_i32_5 = arith.constant 13 : i32
    %5 = vector.broadcast %c13_i32_5 : i32 to vector<1x832xi32>
    %6 = arith.cmpi sge, %2, %5 : vector<1x832xi32>
    %c52_i32 = arith.constant 52 : i32
    %7 = vector.broadcast %c52_i32 : i32 to vector<1x832xi32>
    %8 = arith.cmpi slt, %2, %7 : vector<1x832xi32>
    %9 = arith.andi %6, %8 : vector<1x832xi1>
    %10 = math.log %0 : vector<1x832xf32>
    %cst = arith.constant -1.000000e+02 : f32
    %11 = vector.broadcast %cst : f32 to vector<1x832xf32>
    %12 = arith.maximumf %10, %11 : vector<1x832xf32>
    %cst_6 = arith.constant 1.000000e+00 : f32
    %13 = vector.broadcast %cst_6 : f32 to vector<1x832xf32>
    %14 = arith.subf %13, %0 : vector<1x832xf32>
    %15 = math.log %14 : vector<1x832xf32>
    %cst_7 = arith.constant -1.000000e+02 : f32
    %16 = vector.broadcast %cst_7 : f32 to vector<1x832xf32>
    %17 = arith.maximumf %15, %16 : vector<1x832xf32>
    %18 = arith.subf %12, %17 : vector<1x832xf32>
    %19 = arith.mulf %1, %18 : vector<1x832xf32>
    %20 = arith.addf %19, %17 : vector<1x832xf32>
    %cst_8 = arith.constant 0.000000e+00 : f32
    %21 = vector.broadcast %cst_8 : f32 to vector<1x832xf32>
    %22 = arith.select %4, %20, %21 : vector<1x832xi1>, vector<1x832xf32>
    %23 = vector.shape_cast %22 : vector<1x832xf32> to vector<1x1x832xf32>
    %cst_9 = arith.constant dense<0.000000e+00> : vector<1xf32>
    %24 = vector.multi_reduction <add>, %23, %cst_9 [1, 2] : vector<1x1x832xf32> to vector<1xf32>
    %25 = vector.shape_cast %24 : vector<1xf32> to vector<1x1x1xf32>
    %26 = vector.extract %25[0, 0, 0] : f32 from vector<1x1x1xf32>
    %cst_10 = arith.constant 0.000000e+00 : f32
    %27 = arith.subf %cst_10, %26 : f32
    %cst_11 = arith.constant 0.000000e+00 : f32
    %28 = vector.broadcast %cst_11 : f32 to vector<1x832xf32>
    %29 = arith.select %4, %1, %28 : vector<1x832xi1>, vector<1x832xf32>
    %cst_12 = arith.constant 0.000000e+00 : f32
    %30 = vector.broadcast %cst_12 : f32 to vector<1x13xf32>
    %31 = vector.extract_strided_slice %29 {offsets = [0, 0], sizes = [1, 819], strides = [1, 1]} : vector<1x832xf32> to vector<1x819xf32>
    %32 = tpu.concatenate %30, %31 in 1 : vector<1x13xf32>, vector<1x819xf32> -> vector<1x832xf32>
    %cst_13 = arith.constant 0.000000e+00 : f32
    %33 = vector.broadcast %cst_13 : f32 to vector<1x26xf32>
    %34 = vector.extract_strided_slice %29 {offsets = [0, 0], sizes = [1, 806], strides = [1, 1]} : vector<1x832xf32> to vector<1x806xf32>
    %35 = tpu.concatenate %33, %34 in 1 : vector<1x26xf32>, vector<1x806xf32> -> vector<1x832xf32>
    %36 = arith.addf %32, %35 : vector<1x832xf32>
    %cst_14 = arith.constant 0.000000e+00 : f32
    %37 = vector.broadcast %cst_14 : f32 to vector<1x39xf32>
    %38 = vector.extract_strided_slice %29 {offsets = [0, 0], sizes = [1, 793], strides = [1, 1]} : vector<1x832xf32> to vector<1x793xf32>
    %39 = tpu.concatenate %37, %38 in 1 : vector<1x39xf32>, vector<1x793xf32> -> vector<1x832xf32>
    %40 = arith.addf %36, %39 : vector<1x832xf32>
    %41 = arith.mulf %0, %40 : vector<1x832xf32>
    %42 = arith.subf %41, %1 : vector<1x832xf32>
    %43 = arith.mulf %42, %42 : vector<1x832xf32>
    %cst_15 = arith.constant 0.000000e+00 : f32
    %44 = vector.broadcast %cst_15 : f32 to vector<1x832xf32>
    %45 = arith.select %9, %43, %44 : vector<1x832xi1>, vector<1x832xf32>
    %46 = vector.shape_cast %45 : vector<1x832xf32> to vector<1x1x832xf32>
    %cst_16 = arith.constant dense<0.000000e+00> : vector<1xf32>
    %47 = vector.multi_reduction <add>, %46, %cst_16 [1, 2] : vector<1x1x832xf32> to vector<1xf32>
    %48 = vector.shape_cast %47 : vector<1xf32> to vector<1x1x1xf32>
    %49 = vector.extract %48[0, 0, 0] : f32 from vector<1x1x1xf32>
    %50 = vector.broadcast %27 : f32 to vector<1x128xf32>
    %51 = vector.broadcast %49 : f32 to vector<1x128xf32>
    %52 = tpu.concatenate %50, %51 in 0 : vector<1x128xf32>, vector<1x128xf32> -> vector<2x128xf32>
    %53 = vector.shape_cast %52 : vector<2x128xf32> to vector<1x2x128xf32>
    %c0_17 = arith.constant 0 : index
    %c0_18 = arith.constant 0 : index
    %c0_19 = arith.constant 0 : index
    %54 = vector.load %arg4[%c0_17, %c0_18, %c0_19] : memref<1x2x128xf32, #tpu.memory_space<vmem>>, vector<1x2x128xf32>
    tpu.vector_store %arg4[%c0_17, %c0_18, %c0_19], %53 {strides = array<i32>} : memref<1x2x128xf32, #tpu.memory_space<vmem>>, vector<1x2x128xf32>,
    return
  }
  func.func @transform_0(%arg0: i32) -> (i32, i32) {
    %c0_i32 = arith.constant 0 : i32
    %c0_i32_0 = arith.constant 0 : i32
    %c0_i32_1 = arith.constant 0 : i32
    return %c0_i32, %c0_i32_0 : i32, i32
  }
  func.func @transform_1(%arg0: i32) -> (i32, i32) {
    %c0_i32 = arith.constant 0 : i32
    %c0_i32_0 = arith.constant 0 : i32
    return %arg0, %c0_i32 : i32, i32
  }
  func.func @transform_2(%arg0: i32) -> (i32, i32) {
    %c0_i32 = arith.constant 0 : i32
    %c0_i32_0 = arith.constant 0 : i32
    return %arg0, %c0_i32 : i32, i32
  }
  func.func @transform_3(%arg0: i32) -> (i32, i32, i32) {
    %c0_i32 = arith.constant 0 : i32
    %c0_i32_0 = arith.constant 0 : i32
    %c0_i32_1 = arith.constant 0 : i32
    return %arg0, %c0_i32, %c0_i32_0 : i32, i32, i32
  }
}

</mosaic_0001>

<bundles_post_ra>
// kernel: tpu_custom_call.1
= control target key start
LH: loop header
LB: loop body
LE: loop exit
PB: predicated region body
PF: predicated region fallthrough
CT: control target
= control target key end

     0   :  { %8 = vsyncpa [#allocation3], 0  ;;  %s647_s0 = inlined_call_operand.hbm [shape: s32[1,832], index: 0, kind: input, shape index: {}]   ;;  %s648_s1 = inlined_call_operand.hbm [shape: f32[1,832], index: 1, kind: input, shape index: {}]   ;;  %s649_s2 = inlined_call_operand.vmem [shape: f32[1,832], index: 2, kind: input, shape index: {}]   ;;  %s650_s3 = inlined_call_operand.hbm [shape: f32[1,2,128], index: 3, kind: output, shape index: {}]  }
   0x1   :  { %9 = vsyncpa [#allocation6], 0 }
   0x2   :  { %10 = vsyncpa [#allocation4], 0  ;;  %s474_s12 = smov [#allocation2]   ;;  %s475_s14 = smov [#allocation5]  }
   0x3   :  { %s17_s13 = sshll.u32 %s474_s12, 4  ;;  %s27_s15 = sshll.u32 %s475_s14, 4  ;;  %s18_s13 = int_to_ptr.vmem [resolvable:$true] %s17_s13  ;;  %s28_s15 = int_to_ptr.vmem [resolvable:$true] %s27_s15 }
   0x4   :  { %s402_s18 = scalar_lea.hbm %s647_s0, 112 }
   0x5   :  { %p403_p0 = scmp.ne.s32.totalorder %s647_s0, %s402_s18  ;;  %p406_p1 = scmp.lt.u32.totalorder %s402_s18, %s647_s0 }
   0x7   :  { %p408_p2 = pnand %p406_p1, %p403_p0 }
   0x9   :  { %411 = shalt.err (!%p408_p2)
}
   0xa   :  { %s412_s23 = scalar_lea.vmem %s18_s13, 112  ;;  %s416_s24 = scalar_lea.vmem %s18_s13, 128 }
   0xb   :  { %p413_p3 = scmp.ne.s32.totalorder %s18_s13, %s412_s23  ;;  %p417_p4 = scmp.lt.s32.totalorder %s18_s13, %s18_s13 }
   0xc   :  { %p418_p5 = scmp.lt.s32.totalorder %s416_s24, %s412_s23 }
   0xe   :  { %p419_p6 = por %p418_p5, %p417_p4 }
  0x10   :  { %p420_p7 = pnand %p419_p6, %p413_p3 }
  0x12   :  { %423 = shalt.err (!%p420_p7)
}
  0x13   :  { %20 = dma.hbm_to_vmem [thread:$0]  %s647_s0, 112, %s18_s13, [#allocation3]  }
  0x14   :  { %s424_s29 = scalar_lea.hbm %s648_s1, 112 }
  0x15   :  { %p425_p8 = scmp.ne.s32.totalorder %s648_s1, %s424_s29  ;;  %p428_p9 = scmp.lt.u32.totalorder %s424_s29, %s648_s1 }
  0x17   :  { %p430_p10 = pnand %p428_p9, %p425_p8 }
  0x19   :  { %433 = shalt.err (!%p430_p10)
}
  0x1a   :  { %s434_s7 = scalar_lea.vmem %s28_s15, 112  ;;  %s438_s8 = scalar_lea.vmem %s28_s15, 128 }
  0x1b   :  { %p435_p11 = scmp.ne.s32.totalorder %s28_s15, %s434_s7  ;;  %p439_p12 = scmp.lt.s32.totalorder %s28_s15, %s28_s15 }
  0x1c   :  { %p440_p13 = scmp.lt.s32.totalorder %s438_s8, %s434_s7 }
  0x1e   :  { %p441_p0 = por %p440_p13, %p439_p12 }
  0x20   :  { %p442_p1 = pnand %p441_p0, %p435_p11 }
  0x22   :  { %445 = shalt.err (!%p442_p1)
}
  0x23   :  { %30 = dma.hbm_to_vmem [thread:$0]  %s648_s1, 112, %s28_s15, [#allocation6]  }
  0x24   :  { %468 = dma.done.wait [#allocation3], 112  }
  0x25   :  { %469 = vsyncadd [#allocation3], 4294967184 }
  0x26   :  { %470 = dma.done.wait [#allocation6], 112  }
  0x27   :  { %471 = vsyncadd [#allocation6], 4294967184  ;;  %v58_v0 = vlaneseq  ;;  %v536_v4 = vld [vmem:[%s649_s2] sm:$0x7f]  ;;  %v552_v11 = vld [vmem:[#allocation5] sm:$0x7f] }
  0x28   :  { %v538_v5 = vld [vmem:[#allocation2] sm:$0x7f]  ;;  %s476_s1 = smov 13   ;;  %v49_v16 = vsub.f32 1.0, %v552_v11  ;;  %398 = vlog2.f32 %v552_v11  ;;  %s477_s2 = smov 26   ;;  %vm93_vm1 = vcmask 1040384  }
  0x29   :  { %v525_v1 = vshrl.u32 %v58_v0, 7  ;;  %vm42_vm0 = vcmp.lt.s32.totalorder %v538_v5, 13  ;;  %s478_s12 = smov 39   ;;  %vm105_vm2 = vcmask 516096   ;;  %vm191_vm3 = vcmask 211968   ;;  %s480_s15 = smov [#allocation7]  }
  0x2a   :  { %v118_v8 = vsel %vm42_vm0, %v536_v4, 0.0  ;;  %400 = vlog2.f32 %v49_v16  ;;  %vm162_vm4 = vcmask 105472   ;;  %vm227_vm5 = vcmask 318464   ;;  %s377_s16 = sshll.u32 %s480_s15, 4  ;;  %s378_s16 = int_to_ptr.vmem [resolvable:$true] %s377_s16 }
  0x2b   :  { %v528_v2 = vsub.s32 2, %v525_v1  ;;  %v531_v3 = vsub.s32 0, %v525_v1  ;;  %v542_v6 = vsub.s32 3, %v525_v1  ;;  %v545_v7 = vsub.s32 1, %v525_v1  ;;  %s446_s18 = scalar_lea.vmem %s378_s16, 32  ;;  %p451_p3 = scmp.lt.s32.totalorder %s378_s16, %s378_s16 }
  0x2c   :  { %v559_v14 = vsub.s32 5, %v525_v1  ;;  %v562_v15 = vsub.s32 4, %v525_v1  ;;  %v573_v21 = vsub.s32 6, %v525_v1  ;;  %vm43_vm6 = vcmp.ge.s32.totalorder %v538_v5, 13  ;;  %p447_p2 = scmp.ne.s32.totalorder %s378_s16, %s446_s18  ;;  %p452_p4 = scmp.lt.s32.totalorder %s446_s18, %s446_s18 }
  0x2d   :  { %v131_v9 = vrot.slane %v118_v8, %v528_v2  ;;  %v123_v10 = vrot.slane %v118_v8, %v531_v3  ;;  %v135_v12 = vrot.slane %v118_v8, %v542_v6  ;;  %v127_v13 = vrot.slane %v118_v8, %v545_v7 }
  0x2e   :  { %v143_v17 = vrot.slane %v118_v8, %v559_v14  ;;  %v139_v18 = vrot.slane %v118_v8, %v562_v15  ;;  %v147_v24 = vrot.slane %v118_v8, %v573_v21  ;;  %v479_v8 = vmov 1966171168   ;;  %p453_p5 = por %p452_p4, %p451_p3 }
  0x2f   :  { %152 = vrot.lane.b32.xlu1 %v131_v9, %s476_s1  ;;  %148 = vrot.lane.b32.xlu0 %v123_v10, %s476_s1  ;;  %vm44_vm7 = vcmp.lt.s32.totalorder %v538_v5, 52 }
  0x30   :  { %vm45_vm8 = vmand %vm43_vm6, %vm44_vm7  ;;  %p454_p6 = pnand %p453_p5, %p447_p2 }
  0x32   :  { %v399_v19 = vpop.eup %398 }
  0x33   :  { %154 = vrot.lane.b32.xlu1 %v135_v12, %s476_s1  ;;  %150 = vrot.lane.b32.xlu0 %v127_v13, %s476_s1  ;;  %v47_v22 = vmul.f32 0.6931472, %v399_v19 }
  0x34   :  { %v401_v20 = vpop.eup %400 }
  0x35   :  { %v51_v23 = vmul.f32 0.6931472, %v401_v20  ;;  %v48_v25 = vmax.f32 %v47_v22, -100.0 }
  0x37   :  { %158 = vrot.lane.b32.xlu1 %v143_v17, %s476_s1  ;;  %156 = vrot.lane.b32.xlu0 %v139_v18, %s476_s1  ;;  %v52_v26 = vmax.f32 %v51_v23, -100.0 }
  0x39   :  { %v53_v27 = vsub.f32 %v48_v25, %v52_v26 }
  0x3b   :  { %179 = vrot.lane.b32.xlu1 %v127_v13, %s477_s2  ;;  %177 = vrot.lane.b32.xlu0 %v123_v10, %s477_s2  ;;  %v54_v28 = vmul.f32 %v53_v27, %v536_v4 }
  0x3d   :  { %v55_v29 = vadd.f32 %v54_v28, %v52_v26 }
  0x3f   :  { %183 = vrot.lane.b32.xlu1 %v135_v12, %s477_s2  ;;  %181 = vrot.lane.b32.xlu0 %v131_v9, %s477_s2  ;;  %v56_v30 = vsel %vm42_vm0, %v55_v29, 0.0 }
  0x40   :  { %v61_v31 = vrot.slane %v56_v30, %v531_v3  ;;  %v65_v32 = vrot.slane %v56_v30, %v545_v7  ;;  %v69_v33 = vrot.slane %v56_v30, %v528_v2  ;;  %v73_v37 = vrot.slane %v56_v30, %v542_v6 }
  0x41   :  { %v77_v40 = vrot.slane %v56_v30, %v562_v15  ;;  %v81_v43 = vrot.slane %v56_v30, %v559_v14  ;;  %v85_v46 = vrot.slane %v56_v30, %v573_v21 }
  0x42   :  { %v94_v34 = vsel %vm93_vm1, %v61_v31, 0.0  ;;  %v95_v35 = vsel %vm93_vm1, %v65_v32, 0.0  ;;  %v97_v38 = vsel %vm93_vm1, %v69_v33, 0.0  ;;  %v99_v41 = vsel %vm93_vm1, %v73_v37, 0.0 }
  0x43   :  { %187 = vrot.lane.b32.xlu1 %v143_v17, %s477_s2  ;;  %185 = vrot.lane.b32.xlu0 %v139_v18, %s477_s2  ;;  %v96_v36 = vadd.f32 %v95_v35, %v94_v34  ;;  %v101_v44 = vsel %vm93_vm1, %v77_v40, 0.0  ;;  %v103_v47 = vsel %vm93_vm1, %v81_v43, 0.0  ;;  %v106_v49 = vsel %vm105_vm2, %v85_v46, 0.0 }
  0x45   :  { %v98_v39 = vadd.f32 %v97_v38, %v96_v36 }
  0x47   :  { %189 = vrot.lane.b32.xlu1 %v147_v24, %s477_s2  ;;  %160 = vrot.lane.b32.xlu0 %v147_v24, %s476_s1  ;;  %v100_v42 = vadd.f32 %v99_v41, %v98_v39 }
  0x49   :  { %v102_v45 = vadd.f32 %v101_v44, %v100_v42 }
  0x4b   :  { %215 = vrot.lane.b32.xlu1 %v127_v13, %s478_s12  ;;  %213 = vrot.lane.b32.xlu0 %v123_v10, %s478_s12  ;;  %v104_v48 = vadd.f32 %v103_v47, %v102_v45 }
  0x4d   :  { %v107_v50 = vadd.f32 %v106_v49, %v104_v48 }
  0x4f   :  { %219 = vrot.lane.b32.xlu1 %v135_v12, %s478_s12  ;;  %217 = vrot.lane.b32.xlu0 %v131_v9, %s478_s12  ;;  %v260_v9 = vunpack.c.l.s4 %v479_v8 }
  0x51   :  { %v261_v22 = vunpack.c.0.s8 %v260_v9 }
  0x53   :  { %223 = vrot.lane.b32.xlu1 %v143_v17, %s478_s12  ;;  %221 = vrot.lane.b32.xlu0 %v139_v18, %s478_s12 }
  0x57   :  { %225 = vrot.lane.b32.xlu0 %v147_v24, %s478_s12 }
  0x77   :  { %108 = vadd.xlane.f32.xlu1 %v107_v50 }
  0xa1   :  { %v153_v51 = vpop.permute.xlu1 %152  ;;  %v149_v52 = vpop.permute.xlu0 %148 }
  0xa2   :  { %v176_v19 = vsel %vm162_vm4, 0.0, %v149_v52 }
  0xa5   :  { %v155_v53 = vpop.permute.xlu1 %154  ;;  %v151_v54 = vpop.permute.xlu0 %150 }
  0xa6   :  { %v165_v20 = vsel %vm162_vm4, %v153_v51, %v155_v53  ;;  %v163_v23 = vsel %vm162_vm4, %v149_v52, %v151_v54  ;;  %v164_v24 = vsel %vm162_vm4, %v151_v54, %v153_v51  ;;  %v264_v52 = vsub.s32 %v261_v22, %v525_v1 }
  0xa9   :  { %v159_v55 = vpop.permute.xlu1 %158  ;;  %v157_v56 = vpop.permute.xlu0 %156 }
  0xaa   :  { %v166_v41 = vsel %vm162_vm4, %v155_v53, %v157_v56  ;;  %v167_v42 = vsel %vm162_vm4, %v157_v56, %v159_v55 }
  0xad   :  { %v180_v57 = vpop.permute.xlu1 %179  ;;  %v178_v58 = vpop.permute.xlu0 %177 }
  0xae   :  { %v192_v13 = vsel %vm191_vm3, %v178_v58, %v180_v57  ;;  %v205_v16 = vsel %vm191_vm3, 0.0, %v178_v58 }
  0xaf   :  { %v206_v27 = vadd.f32 %v205_v16, %v176_v19  ;;  %v207_v28 = vadd.f32 %v192_v13, %v163_v23 }
  0xb1   :  { %v184_v59 = vpop.permute.xlu1 %183  ;;  %v182_v60 = vpop.permute.xlu0 %181 }
  0xb2   :  { %v193_v17 = vsel %vm191_vm3, %v180_v57, %v182_v60  ;;  %v194_v18 = vsel %vm191_vm3, %v182_v60, %v184_v59 }
  0xb3   :  { %v208_v29 = vadd.f32 %v193_v17, %v164_v24  ;;  %v209_v30 = vadd.f32 %v194_v18, %v165_v20 }
  0xb5   :  { %v188_v61 = vpop.permute.xlu1 %187  ;;  %v186_v62 = vpop.permute.xlu0 %185 }
  0xb6   :  { %v195_v33 = vsel %vm191_vm3, %v184_v59, %v186_v62  ;;  %v196_v34 = vsel %vm191_vm3, %v186_v62, %v188_v61 }
  0xb7   :  { %v210_v43 = vadd.f32 %v195_v33, %v166_v41  ;;  %v211_v44 = vadd.f32 %v196_v34, %v167_v42 }
  0xb9   :  { %v190_v63 = vpop.permute.xlu1 %189  ;;  %v161_v0 = vpop.permute.xlu0 %160 }
  0xba   :  { %v197_v48 = vsel %vm191_vm3, %v188_v61, %v190_v63  ;;  %v168_v49 = vsel %vm162_vm4, %v159_v55, %v161_v0 }
  0xbb   :  { %v212_v58 = vadd.f32 %v197_v48, %v168_v49 }
  0xbd   :  { %v216_v10 = vpop.permute.xlu1 %215  ;;  %v214_v12 = vpop.permute.xlu0 %213 }
  0xbe   :  { %v228_v25 = vsel %vm227_vm5, %v214_v12, %v216_v10  ;;  %v241_v26 = vsel %vm227_vm5, 0.0, %v214_v12 }
  0xbf   :  { %v242_v37 = vadd.f32 %v241_v26, %v206_v27  ;;  %v243_v38 = vadd.f32 %v228_v25, %v207_v28 }
  0xc1   :  { %v220_v31 = vpop.permute.xlu1 %219  ;;  %v218_v32 = vpop.permute.xlu0 %217  ;;  %v256_v54 = vcombine.low %v242_v37, %v243_v38 }
  0xc2   :  { %v229_v35 = vsel %vm227_vm5, %v216_v10, %v218_v32  ;;  %v230_v36 = vsel %vm227_vm5, %v218_v32, %v220_v31 }
  0xc3   :  { %v244_v39 = vadd.f32 %v229_v35, %v208_v29  ;;  %v245_v40 = vadd.f32 %v230_v36, %v209_v30  ;;  %v265_v8 = vrot.slane %v256_v54, %v264_v52 }
  0xc5   :  { %v257_v45 = vcombine.low %v244_v39, %v245_v40  ;;  %v224_v46 = vpop.permute.xlu1 %223  ;;  %v222_v47 = vpop.permute.xlu0 %221 }
  0xc6   :  { %v231_v50 = vsel %vm227_vm5, %v220_v31, %v222_v47  ;;  %v232_v51 = vsel %vm227_vm5, %v222_v47, %v224_v46 }
  0xc7   :  { %v246_v57 = vadd.f32 %v231_v50, %v210_v43  ;;  %v247_v53 = vadd.f32 %v232_v51, %v211_v44  ;;  %v272_v56 = vrot.slane %v257_v45, %v264_v52 }
  0xc9   :  { %v258_v59 = vcombine.low %v246_v57, %v247_v53  ;;  %v226_v60 = vpop.permute.xlu0 %225  ;;  %v287_v61 = vcombine.low %v265_v8, %v272_v56 }
  0xca   :  { %v233_v62 = vsel %vm227_vm5, %v224_v46, %v226_v60 }
  0xcb   :  { %v248_v9 = vadd.f32 %v233_v62, %v212_v58  ;;  %v279_v63 = vrot.slane %v258_v59, %v264_v52  ;;  %v295_v10 = vrot.slane %v287_v61, %v264_v52 }
  0xcd   :  { %v286_v55 = vrot.slane %v248_v9, %v264_v52 }
  0xcf   :  { %v288_v0 = vcombine.low %v279_v63, %v286_v55 }
  0xd1   :  { %v302_v12 = vrot.slane %v288_v0, %v264_v52 }
  0xd3   :  { %v303_v13 = vcombine.low %v295_v10, %v302_v12 }
  0xd5   :  { %v305_v1 = vmul.f32 %v303_v13, %v552_v11 }
  0xd7   :  { %v306_v16 = vsub.f32 %v305_v1, %v536_v4 }
  0xd9   :  { %v307_v17 = vmul.f32 %v306_v16, %v306_v16 }
  0xdb   :  { %v308_v18 = vsel %vm45_vm8, %v307_v17, 0.0 }
  0xdc   :  { %v313_v19 = vrot.slane %v308_v18, %v531_v3  ;;  %v317_v20 = vrot.slane %v308_v18, %v545_v7  ;;  %v321_v22 = vrot.slane %v308_v18, %v528_v2  ;;  %v325_v23 = vrot.slane %v308_v18, %v542_v6 }
  0xdd   :  { %v329_v5 = vrot.slane %v308_v18, %v562_v15  ;;  %v333_v27 = vrot.slane %v308_v18, %v559_v14  ;;  %v337_v7 = vrot.slane %v308_v18, %v573_v21 }
  0xde   :  { %v345_v24 = vsel %vm93_vm1, %v313_v19, 0.0  ;;  %v346_v11 = vsel %vm93_vm1, %v317_v20, 0.0  ;;  %v348_v4 = vsel %vm93_vm1, %v321_v22, 0.0  ;;  %v350_v3 = vsel %vm93_vm1, %v325_v23, 0.0 }
  0xdf   :  { %v347_v25 = vadd.f32 %v346_v11, %v345_v24  ;;  %v352_v2 = vsel %vm93_vm1, %v329_v5, 0.0  ;;  %v354_v29 = vsel %vm93_vm1, %v333_v27, 0.0  ;;  %v356_v31 = vsel %vm105_vm2, %v337_v7, 0.0 }
  0xe1   :  { %v349_v26 = vadd.f32 %v348_v4, %v347_v25 }
  0xe3   :  { %v351_v28 = vadd.f32 %v350_v3, %v349_v26 }
  0xe5   :  { %v353_v6 = vadd.f32 %v352_v2, %v351_v28 }
  0xe7   :  { %v355_v30 = vadd.f32 %v354_v29, %v353_v6 }
  0xe9   :  { %v357_v32 = vadd.f32 %v356_v31, %v355_v30 }
  0xeb   :  { %358 = vadd.xlane.f32.xlu0 %v357_v32 }
 0x104   :  { %v109_v15 = vpop.xlane.xlu1 %108 }
 0x105   :  { %v110_v33 = vrot.slane %v109_v15, 4 }
 0x107   :  { %v111_v34 = vadd.f32 %v110_v33, %v109_v15 }
 0x109   :  { %v112_v35 = vrot.slane %v111_v34, 2 }
 0x10b   :  { %v113_v14 = vadd.f32 %v112_v35, %v111_v34 }
 0x10d   :  { %v114_v36 = vrot.slane %v113_v14, 1 }
 0x10f   :  { %v115_v37 = vadd.f32 %v114_v36, %v113_v14 }
 0x111   :  { %387 = vpush %v115_v37 }
 0x142   :  { %s388_s13 = spop %387 }
 0x143   :  { %s117_s14 = ssub.f32 0.0, %s388_s13 }
 0x145   :  { %v367_v44 = vstv %s117_s14 }
 0x178   :  { %v359_v38 = vpop.xlane.xlu0 %358 }
 0x179   :  { %v360_v21 = vrot.slane %v359_v38, 4 }
 0x17b   :  { %v361_v39 = vadd.f32 %v360_v21, %v359_v38 }
 0x17d   :  { %v362_v40 = vrot.slane %v361_v39, 2 }
 0x17f   :  { %v363_v41 = vadd.f32 %v362_v40, %v361_v39 }
 0x181   :  { %v364_v42 = vrot.slane %v363_v41, 1 }
 0x183   :  { %v365_v43 = vadd.f32 %v364_v42, %v363_v41 }
 0x185   :  { %389 = vpush %v365_v43 }
 0x1b6   :  { %s390_s17 = spop %389 }
 0x1b7   :  { %v368_v45 = vstv %s390_s17 }
 0x1b8   :  { %v369_v46 = vsel %vm93_vm1, %v367_v44, %v368_v45 }
 0x1b9   :  { %370 = vst [vmem:[#allocation7] sm:$0x3] %v369_v46 }
 0x1ba   :  { %457 = shalt.err (!%p454_p6)
}
 0x1bb   :  { %s458_s21 = scalar_lea.hbm %s650_s3, 32 }
 0x1bc   :  { %p459_p7 = scmp.ne.s32.totalorder %s650_s3, %s458_s21  ;;  %p462_p8 = scmp.lt.u32.totalorder %s458_s21, %s650_s3 }
 0x1be   :  { %p464_p9 = pnand %p462_p8, %p459_p7 }
 0x1c0   :  { %467 = shalt.err (!%p464_p9)
}
 0x1c1   :  { %380 = dma.vmem_to_hbm [thread:$0]  %s378_s16, 32, %s650_s3, [#allocation4]  }
 0x1c2   :  { %472 = dma.done.wait [#allocation4], 32  }
 0x1c3   :  { %473 = vsyncadd [#allocation4], 4294967264 }
 0x1c4   :  { %384 = vsyncpa [#allocation3], 1 }
 0x1c5   :  { %385 = vsyncpa [#allocation6], 1 }
 0x1c6   :  { %386 = vsyncpa [#allocation4], 1 }

</bundles_post_ra>
